<compile_context>
chip_gen: v7x
topology: tpu7x:2x2x1
jax: 0.10.0
libtpu: 0.0.40
codegen_flags: <defaults>
</compile_context>

<pallas_src>
import functools
import math

import jax
import jax.numpy as jnp
from jax import lax
from jax.experimental import pallas as pl
from jax.experimental.pallas import tpu as pltpu


def make_fixed_table(c_in: int, d_model: int) -> jnp.ndarray:
    """Deterministic sinusoidal table, identical to the PyTorch __init__."""
    position = jnp.arange(c_in, dtype=jnp.float32)[:, None]                 # (c_in, 1)
    div_term = jnp.exp(
        jnp.arange(0, d_model, 2, dtype=jnp.float32) * -(math.log(10000.0) / d_model)
    )
    w = jnp.zeros((c_in, d_model), dtype=jnp.float32)
    w = w.at[:, 0::2].set(jnp.sin(position * div_term))
    w = w.at[:, 1::2].set(jnp.cos(position * div_term))
    return w


def _round_up(x: int, m: int) -> int:
    return (x + m - 1) // m * m


def _embed_kernel(idx_ref, hi_ref, lo_ref, out_ref, *, c_in: int, fold: int):
    # idx_ref: (tp, fold) int32 raw indices; slot f of packed row r = logical row r*fold+f.
    # hi_ref / lo_ref: (K, out_w) bf16 block-diagonal split table, K = fold*c_in.
    # out_ref: (tp, out_w) f32 lane-dense packed output block.
    tp = idx_ref.shape[0]
    k = hi_ref.shape[0]

    # In-kernel clamp: guards OOB user indices *and* the unspecified rows Pallas may
    # hand us for a ragged last block (their writes are masked on writeback anyway).
    idx = jnp.clip(idx_ref[...], 0, c_in - 1)

    lane = lax.broadcasted_iota(jnp.int32, (tp, k), 1)

    # Block-diagonal one-hot: lane segment f selects row idx[r, f] of the original
    # table.  The per-segment "- f*c_in" shift replaces the old wrapper-side offset
    # pass.  fold <= 8, unrolled at trace time; segments are disjoint so a sum is a
    # valid one-hot.
    oh = (idx[:, 0:1] == lane).astype(jnp.float32)
    for f in range(1, fold):
        oh = oh + (idx[:, f : f + 1] == (lane - f * c_in)).astype(jnp.float32)
    onehot = oh.astype(jnp.bfloat16)

    # Two bf16 MXU passes (hi + lo), accumulated in f32 -> ~exact f32 gather.
    acc = jnp.dot(onehot, hi_ref[...], preferred_element_type=jnp.float32)
    acc = acc + jnp.dot(onehot, lo_ref[...], preferred_element_type=jnp.float32)
    out_ref[...] = acc


def fixed_embedding(x: jnp.ndarray, table: jnp.ndarray, *,
                    block_out_bytes: int = 2 << 20) -> jnp.ndarray:
    """Pallas equivalent of FixedEmbedding.forward(x) -> emb(x).detach()."""
    c_in, d_model = table.shape
    orig_shape = x.shape
    n = int(math.prod(orig_shape))

    # --- lane packing: fold logical rows per physical (lane-dense) output row -----
    if d_model < 256 and 256 % d_model == 0:
        fold = 256 // d_model                      # 256-wide output (2 full vregs)
    elif d_model < 128 and 128 % d_model == 0:
        fold = 128 // d_model
    else:
        fold = 1
    out_w = _round_up(fold * d_model, 128)         # pad columns if d_model is awkward
    col_pad = out_w - fold * d_model               # nonzero only on the fold==1 path

    # --- indices: only a free reshape; clip/offset/tail handled in-kernel ---------
    idx = jnp.reshape(x, (-1,)).astype(jnp.int32)
    pad_f = (-n) % fold
    if pad_f:                                      # rare: n not a multiple of fold
        idx = jnp.pad(idx, (0, pad_f))
    n_packed = (n + pad_f) // fold
    idx = idx.reshape(n_packed, fold)

    # --- bf16 hi/lo block-diagonal table (tiny; constant-folded under jit) --------
    packed = jnp.kron(jnp.eye(fold, dtype=jnp.float32), table.astype(jnp.float32))
    if col_pad:
        packed = jnp.pad(packed, ((0, 0), (0, col_pad)))
    hi = packed.astype(jnp.bfloat16)
    lo = (packed - hi.astype(jnp.float32)).astype(jnp.bfloat16)
    k = fold * c_in

    # --- tiling: ~2 MiB of f32 output per step; keep >=2 steps once big enough ----
    tp_cap = max(8, (block_out_bytes // (out_w * 4)) // 8 * 8)
    if n_packed >= 2 * tp_cap:
        tp = tp_cap
    elif n_packed >= 1024:                         # split so both v7x TCs get work
        tp = _round_up(pl.cdiv(n_packed, 2), 8)
    else:
        tp = n_packed                              # one block == whole array
    grid = pl.cdiv(n_packed, tp)                   # ragged last block handled by Pallas

    out = pl.pallas_call(
        functools.partial(_embed_kernel, c_in=c_in, fold=fold),
        out_shape=jax.ShapeDtypeStruct((n_packed, out_w), jnp.float32),
        grid=(grid,),
        in_specs=[
            pl.BlockSpec((tp, fold), lambda i: (i, 0)),    # index block
            pl.BlockSpec((k, out_w), lambda i: (0, 0)),    # resident hi table
            pl.BlockSpec((k, out_w), lambda i: (0, 0)),    # resident lo table
        ],
        out_specs=pl.BlockSpec((tp, out_w), lambda i: (i, 0)),
        compiler_params=pltpu.CompilerParams(
            dimension_semantics=("parallel",),
        ),
    )(idx, hi, lo)

    if col_pad:
        out = out[:, :d_model]                     # fold == 1 on this path
    out = out.reshape(n_packed * fold, d_model)    # row-major unpack (free)
    if pad_f:
        out = out[:n]                              # only when fold does not divide n
    return out.reshape(*orig_shape, d_model)


if __name__ == "__main__":
    # Shapes consistent with the module: calendar-sized vocab c_in=16, d_model=32.
    c_in, d_model = 16, 32
    table = make_fixed_table(c_in, d_model)

    key = jax.random.PRNGKey(0)
    k1, k2, k3 = jax.random.split(key, 3)

    # Small case (batch=2, seq=8): single block, 256-lane packed output.
    x = jax.random.randint(k1, (2, 8), 0, c_in, dtype=jnp.int32)
    y = jax.block_until_ready(fixed_embedding(x, table))
    assert y.shape == (2, 8, d_model) and y.dtype == jnp.float32
    assert jnp.allclose(y, jnp.take(table, x, axis=0), atol=1e-5, rtol=1e-5), \
        "mismatch vs reference embedding lookup (small case)"

    # Multi-step grid (2 parallel steps) with a ragged last output block.
    x_big = jax.random.randint(k2, (16, 1030), 0, c_in, dtype=jnp.int32)
    y_big = jax.block_until_ready(fixed_embedding(x_big, table))
    assert jnp.allclose(y_big, jnp.take(table, x_big, axis=0), atol=1e-5, rtol=1e-5), \
        "mismatch vs reference embedding lookup (tiled / ragged-block case)"

    # n not a multiple of the fold factor (exercises the fold-tail path).
    x_odd = jax.random.randint(k3, (3, 7), 0, c_in, dtype=jnp.int32)
    y_odd = jax.block_until_ready(fixed_embedding(x_odd, table))
    assert jnp.allclose(y_odd, jnp.take(table, x_odd, axis=0), atol=1e-5, rtol=1e-5), \
        "mismatch vs reference embedding lookup (fold-tail case)"

    print("KERNEL_OK")
</pallas_src>

<mosaic_0001>
module attributes {stable_mosaic.version = 11 : i64} {
  func.func @_embed_kernel(%arg0: i32, %arg1: memref<2x8xi32, #tpu.memory_space<vmem>>, %arg2: memref<128x256xbf16, #tpu.memory_space<vmem>>, %arg3: memref<128x256xbf16, #tpu.memory_space<vmem>>, %arg4: memref<2x256xf32, #tpu.memory_space<vmem>>) attributes {dimension_semantics = [#tpu.dimension_semantics<parallel>], iteration_bounds = array<i64: 1>, scalar_prefetch = 0 : i64, scratch_operands = 0 : i64, tpu.core_type = #tpu.core_type<tc>, window_params = [{transform_indices = @transform_0, window_bounds = array<i64: 2, 8>}, {pipeline_mode = #tpu.pipeline_mode<synchronous>, transform_indices = @transform_1, window_bounds = array<i64: 128, 256>}, {pipeline_mode = #tpu.pipeline_mode<synchronous>, transform_indices = @transform_2, window_bounds = array<i64: 128, 256>}, {transform_indices = @transform_3, window_bounds = array<i64: 2, 256>}]} {
    %c0 = arith.constant 0 : index
    %c0_0 = arith.constant 0 : index
    %0 = vector.load %arg1[%c0, %c0_0] : memref<2x8xi32, #tpu.memory_space<vmem>>, vector<2x8xi32>
    %c0_i32 = arith.constant 0 : i32
    %c15_i32 = arith.constant 15 : i32
    %1 = vector.broadcast %c0_i32 : i32 to vector<2x8xi32>
    %2 = arith.maxsi %1, %0 : vector<2x8xi32>
    %3 = vector.broadcast %c15_i32 : i32 to vector<2x8xi32>
    %4 = arith.minsi %3, %2 : vector<2x8xi32>
    %5 = tpu.iota {dimensions = array<i32: 1>} : vector<2x128xi32>
    %6 = vector.extract_strided_slice %4 {offsets = [0, 0], sizes = [2, 1], strides = [1, 1]} : vector<2x8xi32> to vector<2x1xi32>
    %7 = vector.broadcast %6 : vector<2x1xi32> to vector<2x128xi32>
    %8 = arith.cmpi eq, %7, %5 : vector<2x128xi32>
    %9 = arith.extui %8 : vector<2x128xi1> to vector<2x128xi32>
    %10 = arith.sitofp %9 : vector<2x128xi32> to vector<2x128xf32>
    %11 = vector.extract_strided_slice %4 {offsets = [0, 1], sizes = [2, 1], strides = [1, 1]} : vector<2x8xi32> to vector<2x1xi32>
    %c16_i32 = arith.constant 16 : i32
    %12 = vector.broadcast %c16_i32 : i32 to vector<2x128xi32>
    %13 = arith.subi %5, %12 : vector<2x128xi32>
    %14 = vector.broadcast %11 : vector<2x1xi32> to vector<2x128xi32>
    %15 = arith.cmpi eq, %14, %13 : vector<2x128xi32>
    %16 = arith.extui %15 : vector<2x128xi1> to vector<2x128xi32>
    %17 = arith.sitofp %16 : vector<2x128xi32> to vector<2x128xf32>
    %18 = arith.addf %10, %17 : vector<2x128xf32>
    %19 = vector.extract_strided_slice %4 {offsets = [0, 2], sizes = [2, 1], strides = [1, 1]} : vector<2x8xi32> to vector<2x1xi32>
    %c32_i32 = arith.constant 32 : i32
    %20 = vector.broadcast %c32_i32 : i32 to vector<2x128xi32>
    %21 = arith.subi %5, %20 : vector<2x128xi32>
    %22 = vector.broadcast %19 : vector<2x1xi32> to vector<2x128xi32>
    %23 = arith.cmpi eq, %22, %21 : vector<2x128xi32>
    %24 = arith.extui %23 : vector<2x128xi1> to vector<2x128xi32>
    %25 = arith.sitofp %24 : vector<2x128xi32> to vector<2x128xf32>
    %26 = arith.addf %18, %25 : vector<2x128xf32>
    %27 = vector.extract_strided_slice %4 {offsets = [0, 3], sizes = [2, 1], strides = [1, 1]} : vector<2x8xi32> to vector<2x1xi32>
    %c48_i32 = arith.constant 48 : i32
    %28 = vector.broadcast %c48_i32 : i32 to vector<2x128xi32>
    %29 = arith.subi %5, %28 : vector<2x128xi32>
    %30 = vector.broadcast %27 : vector<2x1xi32> to vector<2x128xi32>
    %31 = arith.cmpi eq, %30, %29 : vector<2x128xi32>
    %32 = arith.extui %31 : vector<2x128xi1> to vector<2x128xi32>
    %33 = arith.sitofp %32 : vector<2x128xi32> to vector<2x128xf32>
    %34 = arith.addf %26, %33 : vector<2x128xf32>
    %35 = vector.extract_strided_slice %4 {offsets = [0, 4], sizes = [2, 1], strides = [1, 1]} : vector<2x8xi32> to vector<2x1xi32>
    %c64_i32 = arith.constant 64 : i32
    %36 = vector.broadcast %c64_i32 : i32 to vector<2x128xi32>
    %37 = arith.subi %5, %36 : vector<2x128xi32>
    %38 = vector.broadcast %35 : vector<2x1xi32> to vector<2x128xi32>
    %39 = arith.cmpi eq, %38, %37 : vector<2x128xi32>
    %40 = arith.extui %39 : vector<2x128xi1> to vector<2x128xi32>
    %41 = arith.sitofp %40 : vector<2x128xi32> to vector<2x128xf32>
    %42 = arith.addf %34, %41 : vector<2x128xf32>
    %43 = vector.extract_strided_slice %4 {offsets = [0, 5], sizes = [2, 1], strides = [1, 1]} : vector<2x8xi32> to vector<2x1xi32>
    %c80_i32 = arith.constant 80 : i32
    %44 = vector.broadcast %c80_i32 : i32 to vector<2x128xi32>
    %45 = arith.subi %5, %44 : vector<2x128xi32>
    %46 = vector.broadcast %43 : vector<2x1xi32> to vector<2x128xi32>
    %47 = arith.cmpi eq, %46, %45 : vector<2x128xi32>
    %48 = arith.extui %47 : vector<2x128xi1> to vector<2x128xi32>
    %49 = arith.sitofp %48 : vector<2x128xi32> to vector<2x128xf32>
    %50 = arith.addf %42, %49 : vector<2x128xf32>
    %51 = vector.extract_strided_slice %4 {offsets = [0, 6], sizes = [2, 1], strides = [1, 1]} : vector<2x8xi32> to vector<2x1xi32>
    %c96_i32 = arith.constant 96 : i32
    %52 = vector.broadcast %c96_i32 : i32 to vector<2x128xi32>
    %53 = arith.subi %5, %52 : vector<2x128xi32>
    %54 = vector.broadcast %51 : vector<2x1xi32> to vector<2x128xi32>
    %55 = arith.cmpi eq, %54, %53 : vector<2x128xi32>
    %56 = arith.extui %55 : vector<2x128xi1> to vector<2x128xi32>
    %57 = arith.sitofp %56 : vector<2x128xi32> to vector<2x128xf32>
    %58 = arith.addf %50, %57 : vector<2x128xf32>
    %59 = vector.extract_strided_slice %4 {offsets = [0, 7], sizes = [2, 1], strides = [1, 1]} : vector<2x8xi32> to vector<2x1xi32>
    %c112_i32 = arith.constant 112 : i32
    %60 = vector.broadcast %c112_i32 : i32 to vector<2x128xi32>
    %61 = arith.subi %5, %60 : vector<2x128xi32>
    %62 = vector.broadcast %59 : vector<2x1xi32> to vector<2x128xi32>
    %63 = arith.cmpi eq, %62, %61 : vector<2x128xi32>
    %64 = arith.extui %63 : vector<2x128xi1> to vector<2x128xi32>
    %65 = arith.sitofp %64 : vector<2x128xi32> to vector<2x128xf32>
    %66 = arith.addf %58, %65 : vector<2x128xf32>
    %67 = arith.truncf %66 : vector<2x128xf32> to vector<2x128xbf16>
    %c0_1 = arith.constant 0 : index
    %c0_2 = arith.constant 0 : index
    %68 = vector.load %arg2[%c0_1, %c0_2] : memref<128x256xbf16, #tpu.memory_space<vmem>>, vector<128x256xbf16>
    %cst = arith.constant dense<0.000000e+00> : vector<2x256xf32>
    %69 = tpu.matmul %67, %68, %cst {dimension_numbers = #tpu.dot_dimension_numbers<[1], [0], [0], [1], [0, 0, 1, 1], [], []>} : vector<2x128xbf16>, vector<128x256xbf16>, vector<2x256xf32> -> vector<2x256xf32>
    %c0_3 = arith.constant 0 : index
    %c0_4 = arith.constant 0 : index
    %70 = vector.load %arg3[%c0_3, %c0_4] : memref<128x256xbf16, #tpu.memory_space<vmem>>, vector<128x256xbf16>
    %cst_5 = arith.constant dense<0.000000e+00> : vector<2x256xf32>
    %71 = tpu.matmul %67, %70, %cst_5 {dimension_numbers = #tpu.dot_dimension_numbers<[1], [0], [0], [1], [0, 0, 1, 1], [], []>} : vector<2x128xbf16>, vector<128x256xbf16>, vector<2x256xf32> -> vector<2x256xf32>
    %72 = arith.addf %69, %71 : vector<2x256xf32>
    %c0_6 = arith.constant 0 : index
    %c0_7 = arith.constant 0 : index
    %73 = vector.load %arg4[%c0_6, %c0_7] : memref<2x256xf32, #tpu.memory_space<vmem>>, vector<2x256xf32>
    tpu.vector_store %arg4[%c0_6, %c0_7], %72 {strides = array<i32>} : memref<2x256xf32, #tpu.memory_space<vmem>>, vector<2x256xf32>,
    return
  }
  func.func @transform_0(%arg0: i32) -> (i32, i32) {
    %c0_i32 = arith.constant 0 : i32
    %c0_i32_0 = arith.constant 0 : i32
    return %arg0, %c0_i32 : i32, i32
  }
  func.func @transform_1(%arg0: i32) -> (i32, i32) {
    %c0_i32 = arith.constant 0 : i32
    %c0_i32_0 = arith.constant 0 : i32
    %c0_i32_1 = arith.constant 0 : i32
    return %c0_i32, %c0_i32_0 : i32, i32
  }
  func.func @transform_2(%arg0: i32) -> (i32, i32) {
    %c0_i32 = arith.constant 0 : i32
    %c0_i32_0 = arith.constant 0 : i32
    %c0_i32_1 = arith.constant 0 : i32
    return %c0_i32, %c0_i32_0 : i32, i32
  }
  func.func @transform_3(%arg0: i32) -> (i32, i32) {
    %c0_i32 = arith.constant 0 : i32
    %c0_i32_0 = arith.constant 0 : i32
    return %arg0, %c0_i32 : i32, i32
  }
}

</mosaic_0001>

<bundles_post_ra>
// kernel: tpu_custom_call.1
= control target key start
LH: loop header
LB: loop body
LE: loop exit
PB: predicated region body
PF: predicated region fallthrough
CT: control target
= control target key end

     0   :  { %8 = vsyncpa [#allocation3], 0  ;;  %s732_s0 = inlined_call_operand.hbm [shape: s32[2,8], index: 0, kind: input, shape index: {}]   ;;  %s733_s1 = inlined_call_operand.hbm [shape: bf16[128,256], index: 1, kind: input, shape index: {}]   ;;  %s734_s2 = inlined_call_operand.hbm [shape: bf16[128,256], index: 2, kind: input, shape index: {}]   ;;  %s735_s3 = inlined_call_operand.hbm [shape: f32[2,256], index: 3, kind: output, shape index: {}]  }
   0x1   :  { %9 = vsyncpa [#allocation6], 0 }
   0x2   :  { %10 = vsyncpa [#allocation4], 0  ;;  %s643_s12 = smov [#allocation5]   ;;  %s549_s16 = scalar_lea.hbm %s733_s1, 2048 }
   0x3   :  { %s26_s13 = sshll.u32 %s643_s12, 4  ;;  %p550_p0 = scmp.ne.s32.totalorder %s733_s1, %s549_s16  ;;  %s27_s13 = int_to_ptr.vmem [resolvable:$true] %s26_s13 }
   0x4   :  { %p553_p1 = scmp.lt.u32.totalorder %s549_s16, %s733_s1 }
   0x6   :  { %p555_p2 = pnand %p553_p1, %p550_p0 }
   0x8   :  { %558 = shalt.err (!%p555_p2)
}
   0x9   :  { %s559_s21 = scalar_lea.vmem %s27_s13, 2048  ;;  %p564_p4 = scmp.lt.s32.totalorder %s27_s13, %s27_s13 }
   0xa   :  { %p560_p3 = scmp.ne.s32.totalorder %s27_s13, %s559_s21  ;;  %p565_p5 = scmp.lt.s32.totalorder %s559_s21, %s559_s21 }
   0xc   :  { %p566_p6 = por %p565_p5, %p564_p4 }
   0xe   :  { %p567_p7 = pnand %p566_p6, %p560_p3 }
  0x10   :  { %570 = shalt.err (!%p567_p7)
}
  0x11   :  { %s644_s22 = smov 128   ;;  %s645_s23 = smov 8  }
  0x12   :  { %32 = dma.hbm_to_vmem [thread:$0]  %s733_s1, 2048, %s27_s13, [#allocation6], %s644_s22, %s644_s22, %s645_s23  }
  0x13   :  { %s646_s26 = smov [#allocation2]   ;;  %s647_s28 = smov [#allocation7]  }
  0x14   :  { %s17_s27 = sshll.u32 %s646_s26, 4  ;;  %s38_s29 = sshll.u32 %s647_s28, 4  ;;  %s18_s27 = int_to_ptr.vmem [resolvable:$true] %s17_s27  ;;  %s39_s29 = int_to_ptr.vmem [resolvable:$true] %s38_s29 }
  0x15   :  { %s571_s5 = scalar_lea.hbm %s732_s0, 32 }
  0x16   :  { %p572_p8 = scmp.ne.s32.totalorder %s732_s0, %s571_s5  ;;  %p575_p9 = scmp.lt.u32.totalorder %s571_s5, %s732_s0 }
  0x18   :  { %p577_p10 = pnand %p575_p9, %p572_p8 }
  0x1a   :  { %580 = shalt.err (!%p577_p10)
}
  0x1b   :  { %s581_s1 = scalar_lea.vmem %s18_s27, 32  ;;  %p586_p12 = scmp.lt.s32.totalorder %s18_s27, %s18_s27 }
  0x1c   :  { %p582_p11 = scmp.ne.s32.totalorder %s18_s27, %s581_s1  ;;  %p587_p13 = scmp.lt.s32.totalorder %s581_s1, %s581_s1 }
  0x1e   :  { %p588_p0 = por %p587_p13, %p586_p12 }
  0x20   :  { %p589_p1 = pnand %p588_p0, %p582_p11 }
  0x22   :  { %592 = shalt.err (!%p589_p1)
}
  0x23   :  { %20 = dma.hbm_to_vmem [thread:$0]  %s732_s0, 32, %s18_s27, [#allocation3]  }
  0x24   :  { %s593_s14 = scalar_lea.hbm %s734_s2, 2048 }
  0x25   :  { %p594_p2 = scmp.ne.s32.totalorder %s734_s2, %s593_s14  ;;  %p597_p3 = scmp.lt.u32.totalorder %s593_s14, %s734_s2 }
  0x27   :  { %p599_p4 = pnand %p597_p3, %p594_p2 }
  0x29   :  { %602 = shalt.err (!%p599_p4)
}
  0x2a   :  { %s603_s19 = scalar_lea.vmem %s39_s29, 2048  ;;  %p608_p6 = scmp.lt.s32.totalorder %s39_s29, %s39_s29 }
  0x2b   :  { %p604_p5 = scmp.ne.s32.totalorder %s39_s29, %s603_s19  ;;  %p609_p7 = scmp.lt.s32.totalorder %s603_s19, %s603_s19 }
  0x2d   :  { %p610_p8 = por %p609_p7, %p608_p6 }
  0x2f   :  { %p611_p9 = pnand %p610_p8, %p604_p5 }
  0x31   :  { %614 = shalt.err (!%p611_p9)
}
  0x32   :  { %44 = dma.hbm_to_vmem [thread:$0]  %s734_s2, 2048, %s39_s29, [#allocation6], %s644_s22, %s644_s22, %s645_s23  }
  0x33   :  { %637 = dma.done.wait [#allocation3], 32  }
  0x34   :  { %638 = vsyncadd [#allocation3], 4294967264 }
  0x35   :  { %639 = dma.done.wait [#allocation6], 4096  }
  0x36   :  { %640 = vsyncadd [#allocation6], 4294963200  ;;  %v648_v0 = vmov 2   ;;  %v649_v1 = vmov 0   ;;  %v55_v2 = vld [vmem:[#allocation2] sm:$0x3]  ;;  %v60_v43 = vlaneseq }
  0x37   :  { %494 = vset.pattern.permute.xlu1 %v648_v0  ;;  %492 = vset.pattern.permute.xlu0 %v649_v1  ;;  %vm56_vm0 = vcmp.gt.s32.totalorder %v55_v2, 0  ;;  %v501_v3 = vld [vmem:[#allocation7 + $0x4] ss:$8 sps:$4 sm:$0xff]   ;;  %v505_v6 = vld [vmem:[#allocation7] ss:$8 sps:$4 sm:$0xff]   ;;  %v650_v16 = vmov 3  }
  0x38   :  { %269 = vmatprep.mubr.bf16.mxu1 %v649_v1  ;;  %390 = vmatprep.mubr.bf16.mxu0 %v649_v1  ;;  %v57_v4 = vsel %vm56_vm0, %v55_v2, 0  ;;  %v503_v5 = vld [vmem:[#allocation5 + $0x4] ss:$8 sps:$4 sm:$0xff]   ;;  %v506_v7 = vld [vmem:[#allocation5] ss:$8 sps:$4 sm:$0xff]   ;;  %v651_v17 = vmov 1  }
  0x39   :  { %vm58_vm1 = vcmp.lt.s32.totalorder %v57_v4, 15  ;;  %237 = vmatprep.subr.bf16.mxu1 %v501_v3  ;;  %v507_v8 = vld [vmem:[#allocation7 + $0x14] ss:$8 sps:$4 sm:$0xff]   ;;  %358 = vmatprep.subr.bf16.mxu0 %v503_v5  ;;  %v511_v11 = vld [vmem:[#allocation7 + $0x10] ss:$8 sps:$4 sm:$0xff]   ;;  %v652_v23 = vmov 4  }
  0x3a   :  { %v59_v9 = vsel %vm58_vm1, %v57_v4, 15  ;;  %238 = vmatpush1.bf16.msra.mxu1 %v505_v6  ;;  %v509_v10 = vld [vmem:[#allocation5 + $0x14] ss:$8 sps:$4 sm:$0xff]   ;;  %359 = vmatpush1.bf16.msra.mxu0 %v506_v7  ;;  %v512_v12 = vld [vmem:[#allocation5 + $0x10] ss:$8 sps:$4 sm:$0xff]   ;;  %v653_v24 = vmov 5  }
  0x3b   :  { %78 = vperm.xlu1 %494, %v59_v9   ;;  %63 = vperm.xlu0 %492, %v59_v9   ;;  %v513_v13 = vld [vmem:[#allocation7 + $0x24] ss:$8 sps:$4 sm:$0xff]   ;;  %v517_v15 = vld [vmem:[#allocation7 + $0x20] ss:$8 sps:$4 sm:$0xff]   ;;  %v519_v18 = vld [vmem:[#allocation7 + $0x34] ss:$8 sps:$4 sm:$0xff]  }
  0x3c   :  { %239 = vmatprep.subr.bf16.mxu1 %v507_v8  ;;  %360 = vmatprep.subr.bf16.mxu0 %v509_v10  ;;  %v515_v14 = vld [vmem:[#allocation5 + $0x24] ss:$8 sps:$4 sm:$0xff]   ;;  %v518_v19 = vld [vmem:[#allocation5 + $0x20] ss:$8 sps:$4 sm:$0xff]   ;;  %v523_v20 = vld [vmem:[#allocation7 + $0x30] ss:$8 sps:$4 sm:$0xff]  }
  0x3d   :  { %v521_v21 = vld [vmem:[#allocation5 + $0x34] ss:$8 sps:$4 sm:$0xff]   ;;  %v525_v22 = vld [vmem:[#allocation7 + $0x44] ss:$8 sps:$4 sm:$0xff]   ;;  %v524_v25 = vld [vmem:[#allocation5 + $0x30] ss:$8 sps:$4 sm:$0xff]  }
  0x3e   :  { %240 = vmatpush1.bf16.msra.mxu1 %v511_v11  ;;  %361 = vmatpush1.bf16.msra.mxu0 %v512_v12  ;;  %v527_v26 = vld [vmem:[#allocation5 + $0x44] ss:$8 sps:$4 sm:$0xff]   ;;  %v529_v27 = vld [vmem:[#allocation7 + $0x40] ss:$8 sps:$4 sm:$0xff]   ;;  %v531_v28 = vld [vmem:[#allocation7 + $0x54] ss:$8 sps:$4 sm:$0xff]  }
  0x3f   :  { %495 = vset.pattern.permute.xlu1 %v650_v16  ;;  %493 = vset.pattern.permute.xlu0 %v651_v17  ;;  %v654_v29 = vmov 6   ;;  %v655_v30 = vmov 7   ;;  %v530_v31 = vld [vmem:[#allocation5 + $0x40] ss:$8 sps:$4 sm:$0xff]   ;;  %v533_v32 = vld [vmem:[#allocation5 + $0x54] ss:$8 sps:$4 sm:$0xff]  }
  0x40   :  { %86 = vperm.xlu1 %495, %v59_v9   ;;  %70 = vperm.xlu0 %493, %v59_v9   ;;  %v535_v33 = vld [vmem:[#allocation7 + $0x50] ss:$8 sps:$4 sm:$0xff]   ;;  %v537_v34 = vld [vmem:[#allocation7 + $0x64] ss:$8 sps:$4 sm:$0xff]   ;;  %v541_v37 = vld [vmem:[#allocation7 + $0x60] ss:$8 sps:$4 sm:$0xff]  }
  0x41   :  { %241 = vmatprep.subr.bf16.mxu1 %v513_v13  ;;  %362 = vmatprep.subr.bf16.mxu0 %v515_v14  ;;  %v536_v35 = vld [vmem:[#allocation5 + $0x50] ss:$8 sps:$4 sm:$0xff]   ;;  %v539_v36 = vld [vmem:[#allocation5 + $0x64] ss:$8 sps:$4 sm:$0xff]   ;;  %v543_v38 = vld [vmem:[#allocation7 + $0x74] ss:$8 sps:$4 sm:$0xff]  }
  0x42   :  { %242 = vmatpush1.bf16.msra.mxu1 %v517_v15  ;;  %363 = vmatpush1.bf16.msra.mxu0 %v518_v19  ;;  %v542_v39 = vld [vmem:[#allocation5 + $0x60] ss:$8 sps:$4 sm:$0xff]   ;;  %v545_v40 = vld [vmem:[#allocation5 + $0x74] ss:$8 sps:$4 sm:$0xff]   ;;  %v547_v41 = vld [vmem:[#allocation7 + $0x70] ss:$8 sps:$4 sm:$0xff]  }
  0x43   :  { %243 = vmatprep.subr.bf16.mxu1 %v519_v18  ;;  %364 = vmatprep.subr.bf16.mxu0 %v521_v21  ;;  %v548_v42 = vld [vmem:[#allocation5 + $0x70] ss:$8 sps:$4 sm:$0xff]   ;;  %v61_v44 = vand.u32 127, %v60_v43  ;;  %v656_v52 = vmov 0.0   ;;  %s657_s2 = smov [#allocation8]  }
  0x44   :  { %496 = vset.pattern.permute.xlu1 %v652_v23  ;;  %497 = vset.pattern.permute.xlu0 %v653_v24  ;;  %s417_s21 = sshll.u32 %s657_s2, 4  ;;  %s418_s21 = int_to_ptr.vmem [resolvable:$true] %s417_s21 }
  0x45   :  { %94 = vperm.xlu1 %496, %v59_v9   ;;  %102 = vperm.xlu0 %497, %v59_v9   ;;  %v430_v47 = vadd.s32 4294967264, %v61_v44  ;;  %v428_v48 = vadd.s32 4294967280, %v61_v44  ;;  %v432_v49 = vadd.s32 4294967248, %v61_v44  ;;  %v434_v55 = vadd.s32 4294967232, %v61_v44  ;;  %s615_s22 = scalar_lea.vmem %s418_s21, 64  ;;  %p620_p11 = scmp.lt.s32.totalorder %s418_s21, %s418_s21 }
  0x46   :  { %244 = vmatpush1.bf16.msra.mxu1 %v523_v20  ;;  %365 = vmatpush1.bf16.msra.mxu0 %v524_v25  ;;  %v436_v56 = vadd.s32 4294967216, %v61_v44  ;;  %v438_v1 = vadd.s32 4294967200, %v61_v44  ;;  %v440_v6 = vadd.s32 4294967184, %v61_v44  ;;  %p616_p10 = scmp.ne.s32.totalorder %s418_s21, %s615_s22  ;;  %p621_p12 = scmp.lt.s32.totalorder %s615_s22, %s615_s22 }
  0x47   :  { %245 = vmatprep.subr.bf16.mxu1 %v525_v22  ;;  %366 = vmatprep.subr.bf16.mxu0 %v527_v26 }
  0x48   :  { %p622_p13 = por %p621_p12, %p620_p11 }
  0x49   :  { %498 = vset.pattern.permute.xlu1 %v654_v29  ;;  %500 = vset.pattern.permute.xlu0 %v655_v30 }
  0x4a   :  { %110 = vperm.xlu1 %498, %v59_v9   ;;  %246 = vmatpush1.bf16.msra.mxu1 %v529_v27  ;;  %p623_p0 = pnand %p622_p13, %p616_p10 }
  0x4b   :  { %247 = vmatprep.subr.bf16.mxu1 %v531_v28  ;;  %367 = vmatpush1.bf16.msra.mxu0 %v530_v31 }
  0x4c   :  { %368 = vmatprep.subr.bf16.mxu0 %v533_v32 }
  0x4e   :  { %499 = vset.pattern.permute.xlu1 %v655_v30  ;;  %248 = vmatpush1.bf16.msra.mxu1 %v535_v33 }
  0x4f   :  { %118 = vperm.xlu1 %499, %v59_v9   ;;  %249 = vmatprep.subr.bf16.mxu1 %v537_v34 }
  0x50   :  { %369 = vmatpush1.bf16.msra.mxu0 %v536_v35 }
  0x51   :  { %370 = vmatprep.subr.bf16.mxu0 %v539_v36 }
  0x52   :  { %250 = vmatpush1.bf16.msra.mxu1 %v541_v37 }
  0x53   :  { %251 = vmatprep.subr.bf16.mxu1 %v543_v38 }
  0x54   :  { %371 = vmatpush1.bf16.msra.mxu0 %v542_v39 }
  0x55   :  { %372 = vmatprep.subr.bf16.mxu0 %v545_v40 }
  0x56   :  { %252 = vmatpush1.bf16.msra.mxu1 %v547_v41 }
  0x58   :  { %373 = vmatpush1.bf16.msra.mxu0 %v548_v42 }
  0xba   :  { %v79_v45 = vpop.permute.xlu1 %78  ;;  %v64_v46 = vpop.permute.xlu0 %63 }
  0xbb   :  { %vm65_vm2 = vcmp.eq.s32.totalorder %v64_v46, %v61_v44  ;;  %vm80_vm3 = vcmp.eq.s32.totalorder %v79_v45, %v430_v47 }
  0xbc   :  { %v427_v53 = vsel %vm65_vm2, 1.0, %v656_v52  ;;  %v431_v58 = vsel %vm80_vm3, 1.0, %v656_v52 }
  0xbf   :  { %v87_v50 = vpop.permute.xlu1 %86  ;;  %v71_v51 = vpop.permute.xlu0 %70 }
  0xc0   :  { %vm72_vm4 = vcmp.eq.s32.totalorder %v71_v51, %v428_v48  ;;  %vm88_vm5 = vcmp.eq.s32.totalorder %v87_v50, %v432_v49 }
  0xc1   :  { %v429_v54 = vsel %vm72_vm4, 1.0, %v656_v52  ;;  %v433_v62 = vsel %vm88_vm5, 1.0, %v656_v52 }
  0xc2   :  { %v75_v57 = vadd.f32 %v429_v54, %v427_v53 }
  0xc4   :  { %v83_v59 = vadd.f32 %v431_v58, %v75_v57  ;;  %v95_v60 = vpop.permute.xlu1 %94  ;;  %v103_v61 = vpop.permute.xlu0 %102 }
  0xc5   :  { %vm96_vm6 = vcmp.eq.s32.totalorder %v95_v60, %v434_v55  ;;  %vm104_vm7 = vcmp.eq.s32.totalorder %v103_v61, %v436_v56 }
  0xc6   :  { %v91_v63 = vadd.f32 %v433_v62, %v83_v59  ;;  %v435_v0 = vsel %vm96_vm6, 1.0, %v656_v52  ;;  %v437_v3 = vsel %vm104_vm7, 1.0, %v656_v52 }
  0xc8   :  { %v99_v2 = vadd.f32 %v435_v0, %v91_v63 }
  0xc9   :  { %v111_v4 = vpop.permute.xlu1 %110 }
  0xca   :  { %vm112_vm8 = vcmp.eq.s32.totalorder %v111_v4, %v438_v1  ;;  %v107_v5 = vadd.f32 %v437_v3, %v99_v2 }
  0xcb   :  { %v439_v7 = vsel %vm112_vm8, 1.0, %v656_v52 }
  0xcc   :  { %v115_v9 = vadd.f32 %v439_v7, %v107_v5 }
  0xce   :  { %v119_v8 = vpop.permute.xlu1 %118 }
  0xcf   :  { %vm120_vm9 = vcmp.eq.s32.totalorder %v119_v8, %v440_v6 }
  0xd0   :  { %v441_v10 = vsel %vm120_vm9, 1.0, %v656_v52 }
  0xd1   :  { %v123_v11 = vadd.f32 %v441_v10, %v115_v9 }
  0xd3   :  { %v124_v12 = vpack.c.bf16 %v123_v11, %v123_v11 }
  0xd5   :  { %270 = vmatmul.mubr.bf16.vlgmr.msra.gmra.mrb[0].mxu1 %v124_v12  ;;  %391 = vmatmul.mubr.bf16.vlgmr.msra.gmra.mrb[0].mxu0 %v124_v12 }
 0x1a8   :  { %v271_v13 = vpop.f32.mrb[0].mxu1  ;;  %v392_v14 = vpop.f32.mrb[0].mxu0 }
 0x1a9   :  { %v393_v15 = vadd.f32 %v392_v14, %v271_v13  ;;  %v273_v16 = vpop.f32.mrb[1].mxu1  ;;  %v394_v17 = vpop.f32.mrb[1].mxu0 }
 0x1aa   :  { %v395_v18 = vadd.f32 %v394_v17, %v273_v16  ;;  %v275_v19 = vpop.f32.mrb[2].mxu1  ;;  %v396_v20 = vpop.f32.mrb[2].mxu0 }
 0x1ab   :  { %v276_v21 = vpop.f32.mrb[3].mxu1  ;;  %v397_v22 = vpop.f32.mrb[3].mxu0 }
 0x1ac   :  { %v401_v23 = vcombine.low %v393_v15, %v395_v18 }
 0x1ae   :  { %474 = vst.sshfl [vmem:[#allocation8] sm:$0x33 pattern:$0x76325410] %v401_v23 }
 0x1af   :  { %626 = shalt.err (!%p623_p0)
}
 0x1b0   :  { %s627_s25 = scalar_lea.hbm %s735_s3, 64 }
 0x1b1   :  { %p628_p1 = scmp.ne.s32.totalorder %s735_s3, %s627_s25  ;;  %p631_p2 = scmp.lt.u32.totalorder %s627_s25, %s735_s3 }
 0x1b3   :  { %p633_p3 = pnand %p631_p2, %p628_p1 }
 0x1b5   :  { %636 = shalt.err (!%p633_p3)
}
 0x1b6   :  { %420 = dma.vmem_to_hbm [thread:$0]  %s418_s21, 64, %s735_s3, [#allocation4]  }
 0x1b7   :  { %641 = dma.done.wait [#allocation4], 64  }
 0x1b8   :  { %642 = vsyncadd [#allocation4], 4294967232 }
 0x1b9   :  { %424 = vsyncpa [#allocation3], 1 }
 0x1ba   :  { %425 = vsyncpa [#allocation6], 1 }
 0x1bb   :  { %426 = vsyncpa [#allocation4], 1 }

</bundles_post_ra>
